<compile_context>
chip_gen: v7x
topology: tpu7x:2x2x1
jax: 0.10.0
libtpu: 0.0.40
codegen_flags: <defaults>
</compile_context>

<pallas_src>
import jax
import jax.numpy as jnp
import numpy as np
from jax.experimental import pallas as pl
from jax.experimental.pallas import tpu as pltpu


def _attention_kernel(enc_ref, hb_ref, we_ref, v_ref, out_ref):
    """One batch tile per grid step (seq-major encoder layout).

    enc_ref : [S, BT, 2H]  encoder states for this batch tile (native seq-major layout)
    hb_ref  : [BT, H]      pre-computed hidden @ Wh + b (hoisted to wrapper)
    we_ref  : [2H, H]      attn weight slice that multiplies encoder states
    v_ref   : [1, H]       v weight (no bias), lane-dense row vector
    out_ref : [BT, S]      softmax attention scores over the sequence (lane-dense)
    """
    s, bt, k = enc_ref.shape
    h = we_ref.shape[1]

    # One big flattened matmul.  bt % 8 == 0 (enforced by the wrapper), so merging the
    # leading seq dim with the sublane batch dim is a layout no-op.
    enc2 = enc_ref[...].reshape(s * bt, k)                                    # [S*BT, 2H]
    e_proj = jnp.dot(enc2, we_ref[...], preferred_element_type=jnp.float32)   # [S*BT, H]

    # Add the hoisted hidden-projection (+bias) per batch column, tanh (EUP).
    energy = jnp.tanh(e_proj.reshape(s, bt, h) + hb_ref[...][None, :, :])     # [S, BT, H]

    # Linear(H -> 1, bias=False) as VPU multiply + lane reduction (no N=1 MXU matmul).
    scores = jnp.sum(energy * v_ref[...][None, :, :], axis=-1)                # [S, BT]

    # Small in-VMEM transpose so the softmax reduces over lanes and the store is
    # lane-dense [BT, S].
    scores = scores.T                                                         # [BT, S]
    m = jnp.max(scores, axis=-1, keepdims=True)
    e = jnp.exp(scores - m)
    out_ref[...] = e / jnp.sum(e, axis=-1, keepdims=True)                     # [BT, S]


def _choose_batch_tile(B, S, H):
    """Pick BT (multiple of 8, <= B) for the [S, BT, 2H] encoder block.

    Targets ~1.5K flattened matmul rows per grid step while keeping the double-buffered
    encoder tile plus f32 intermediates comfortably inside v7x's 64 MiB VMEM.
    """
    B8 = (B // 8) * 8                                    # caller guarantees B >= 8
    rows_target = 1536
    enc_tile_budget = 8 * 1024 * 1024                    # bytes for ONE enc tile
    bt_rows = rows_target // max(S, 1)
    bt_vmem = enc_tile_budget // max(S * 2 * H * 4, 1)
    bt = max(8, (min(bt_rows, bt_vmem) // 8) * 8)
    bt = min(bt, B8)
    # Keep >= 2 grid tiles when the batch allows it, so both v7x TensorCores get work.
    if bt >= B and B8 >= 16:
        bt = max(8, ((B8 // 2) // 8) * 8)
    return bt


def attention_forward(encoder_states, hidden, cell, attn_w, attn_b, v_w):
    """encoder_states: [S, B, 2H] (seq-major), hidden: [B, H], cell: [B, H] (unused).

    attn_w: [H, 3H] (PyTorch Linear weight), attn_b: [H], v_w: [1, H].
    Returns attention weights [B, S].
    """
    del cell  # unused by the PyTorch forward
    S, B, twoH = encoder_states.shape
    H = hidden.shape[-1]
    assert twoH == 2 * H

    # Glue (all tiny vs. encoder_states): split/transpose the weight, hoist the hidden
    # projection as one [B,H] x [H,H] GEMM.  encoder_states itself is NOT transposed and
    # (for B >= 8) NOT padded -- the kernel consumes the native seq-major layout.
    w_t = attn_w.T.astype(jnp.float32)                        # [3H, H]
    wh = w_t[:H, :]                                           # [H, H]   (multiplies hidden)
    we = w_t[H:, :]                                           # [2H, H]  (multiplies encoder)
    hb = jnp.dot(hidden.astype(jnp.float32), wh,
                 preferred_element_type=jnp.float32) + attn_b.astype(jnp.float32)[None, :]
    vrow = v_w.astype(jnp.float32)                            # [1, H]
    enc = encoder_states.astype(jnp.float32)                  # [S, B, 2H], layout untouched

    if B < 8:
        # Degenerate tiny-batch corner: pad batch up to one sublane tile so the in-kernel
        # flatten stays a layout no-op.  (Only this batch-starved case copies enc.)
        b_eff, bt = 8, 8
        enc = jnp.pad(enc, ((0, 0), (0, b_eff - B), (0, 0)))
        hb = jnp.pad(hb, ((0, b_eff - B), (0, 0)))
    else:
        b_eff = B
        bt = _choose_batch_tile(B, S, H)

    grid = (pl.cdiv(b_eff, bt),)

    # Explicit VMEM budget: double-buffered blocks + live f32 intermediates, capped for
    # v7x's 64 MiB VMEM (scoped default would otherwise be 32 MiB).
    enc_tile = S * bt * twoH * 4
    inter = S * bt * H * 4
    small = 2 * (bt * H + bt * S) * 4 + 2 * (twoH * H + H) * 4
    vmem_limit = int(min(64 * 1024 * 1024,
                         max(16 * 1024 * 1024,
                             2 * enc_tile + 3 * inter + small + (4 << 20))))

    out = pl.pallas_call(
        _attention_kernel,
        out_shape=jax.ShapeDtypeStruct((b_eff, S), jnp.float32),
        grid_spec=pltpu.PrefetchScalarGridSpec(
            num_scalar_prefetch=0,
            grid=grid,
            in_specs=[
                pl.BlockSpec((S, bt, twoH), lambda i: (0, i, 0)),   # enc tile (seq-major)
                pl.BlockSpec((bt, H), lambda i: (i, 0)),            # hb tile
                pl.BlockSpec((twoH, H), lambda i: (0, 0)),          # we (shared)
                pl.BlockSpec((1, H), lambda i: (0, 0)),             # v  (shared)
            ],
            out_specs=pl.BlockSpec((bt, S), lambda i: (i, 0)),      # lane-dense [BT, S]
        ),
        compiler_params=pltpu.CompilerParams(
            dimension_semantics=("parallel",),                      # shard tiles across v7x TCs
            vmem_limit_bytes=vmem_limit),
    )(enc, hb, we, vrow)

    return out[:B]                                            # [B, S]


def _reference(encoder_states, hidden, attn_w, attn_b, v_w):
    """Pure-JAX reference matching the PyTorch forward exactly."""
    S, B, _ = encoder_states.shape
    hid_rep = jnp.repeat(hidden[:, None, :], S, axis=1)       # [B, S, H]
    enc = jnp.transpose(encoder_states, (1, 0, 2))            # [B, S, 2H]
    x = jnp.concatenate((hid_rep, enc), axis=2)               # [B, S, 3H]
    energy = jnp.tanh(jnp.einsum("bsk,hk->bsh", x, attn_w) + attn_b)
    att = jnp.einsum("bsh,oh->bso", energy, v_w)[..., 0]      # [B, S]
    return jax.nn.softmax(att, axis=1)


if __name__ == "__main__":
    def _run_case(key, B, S, H):
        k_enc, k_hid, k_cell, k_w, k_b, k_v = jax.random.split(key, 6)
        encoder_states = jax.random.normal(k_enc, (S, B, 2 * H), dtype=jnp.float32)
        hidden = jax.random.normal(k_hid, (B, H), dtype=jnp.float32)
        cell = jax.random.normal(k_cell, (B, H), dtype=jnp.float32)

        # Deterministic parameter init (shapes match nn.Linear defaults).
        bound_attn = 1.0 / np.sqrt(3 * H)
        attn_w = jax.random.uniform(k_w, (H, 3 * H), jnp.float32, -bound_attn, bound_attn)
        attn_b = jax.random.uniform(k_b, (H,), jnp.float32, -bound_attn, bound_attn)
        bound_v = 1.0 / np.sqrt(H)
        v_w = jax.random.uniform(k_v, (1, H), jnp.float32, -bound_v, bound_v)

        out = attention_forward(encoder_states, hidden, cell, attn_w, attn_b, v_w)
        out = jax.block_until_ready(out)

        ref = _reference(encoder_states, hidden, attn_w, attn_b, v_w)
        assert out.shape == (B, S)
        np.testing.assert_allclose(np.asarray(out), np.asarray(ref), rtol=1e-5, atol=1e-5)
        np.testing.assert_allclose(np.asarray(out.sum(axis=1)), np.ones(B), rtol=1e-5, atol=1e-5)

    key = jax.random.PRNGKey(0)
    k1, k2 = jax.random.split(key)
    # Module-implied small shapes (exercises the tiny-batch pad path).
    _run_case(k1, B=2, S=8, H=32)
    # Larger batch: exercises the seq-major no-transpose/no-pad main path with >=2 grid
    # tiles and a ragged boundary block (B % bt != 0).
    _run_case(k2, B=20, S=24, H=32)

    print("KERNEL_OK")
</pallas_src>

<mosaic_0001>
module attributes {stable_mosaic.version = 11 : i64} {
  func.func @_attention_kernel(%arg0: i32, %arg1: memref<8x8x64xf32, #tpu.memory_space<vmem>>, %arg2: memref<8x32xf32, #tpu.memory_space<vmem>>, %arg3: memref<64x32xf32, #tpu.memory_space<vmem>>, %arg4: memref<1x32xf32, #tpu.memory_space<vmem>>, %arg5: memref<8x8xf32, #tpu.memory_space<vmem>>) attributes {dimension_semantics = [#tpu.dimension_semantics<parallel>], iteration_bounds = array<i64: 1>, scalar_prefetch = 0 : i64, scratch_operands = 0 : i64, tpu.core_type = #tpu.core_type<tc>, window_params = [{transform_indices = @transform_0, window_bounds = array<i64: 8, 8, 64>}, {transform_indices = @transform_1, window_bounds = array<i64: 8, 32>}, {pipeline_mode = #tpu.pipeline_mode<synchronous>, transform_indices = @transform_2, window_bounds = array<i64: 64, 32>}, {pipeline_mode = #tpu.pipeline_mode<synchronous>, transform_indices = @transform_3, window_bounds = array<i64: 1, 32>}, {transform_indices = @transform_4, window_bounds = array<i64: 8, 8>}]} {
    %c0 = arith.constant 0 : index
    %c0_0 = arith.constant 0 : index
    %c0_1 = arith.constant 0 : index
    %0 = vector.load %arg1[%c0, %c0_0, %c0_1] : memref<8x8x64xf32, #tpu.memory_space<vmem>>, vector<8x8x64xf32>
    %1 = vector.shape_cast %0 : vector<8x8x64xf32> to vector<64x64xf32>
    %c0_2 = arith.constant 0 : index
    %c0_3 = arith.constant 0 : index
    %2 = vector.load %arg3[%c0_2, %c0_3] : memref<64x32xf32, #tpu.memory_space<vmem>>, vector<64x32xf32>
    %cst = arith.constant dense<0.000000e+00> : vector<64x32xf32>
    %3 = tpu.matmul %1, %2, %cst {dimension_numbers = #tpu.dot_dimension_numbers<[1], [0], [0], [1], [0, 0, 1, 1], [], []>} : vector<64x64xf32>, vector<64x32xf32>, vector<64x32xf32> -> vector<64x32xf32>
    %4 = vector.shape_cast %3 : vector<64x32xf32> to vector<8x8x32xf32>
    %c0_4 = arith.constant 0 : index
    %c0_5 = arith.constant 0 : index
    %5 = vector.load %arg2[%c0_4, %c0_5] : memref<8x32xf32, #tpu.memory_space<vmem>>, vector<8x32xf32>
    %6 = vector.shape_cast %5 : vector<8x32xf32> to vector<1x8x32xf32>
    %7 = vector.broadcast %6 : vector<1x8x32xf32> to vector<8x8x32xf32>
    %8 = arith.addf %4, %7 : vector<8x8x32xf32>
    %9 = math.tanh %8 : vector<8x8x32xf32>
    %c0_6 = arith.constant 0 : index
    %c0_7 = arith.constant 0 : index
    %10 = vector.load %arg4[%c0_6, %c0_7] : memref<1x32xf32, #tpu.memory_space<vmem>>, vector<1x32xf32>
    %11 = vector.shape_cast %10 : vector<1x32xf32> to vector<1x1x32xf32>
    %12 = vector.broadcast %11 : vector<1x1x32xf32> to vector<8x8x32xf32>
    %13 = arith.mulf %9, %12 : vector<8x8x32xf32>
    %cst_8 = arith.constant dense<0.000000e+00> : vector<8x8xf32>
    %14 = vector.multi_reduction <add>, %13, %cst_8 [2] : vector<8x8x32xf32> to vector<8x8xf32>
    %15 = tpu.transpose %14, [1, 0] : vector<8x8xf32> -> vector<8x8xf32>
    %cst_9 = arith.constant dense<0xFF800000> : vector<8xf32>
    %16 = vector.multi_reduction <maximumf>, %15, %cst_9 [1] : vector<8x8xf32> to vector<8xf32>
    %17 = vector.shape_cast %16 : vector<8xf32> to vector<8x1xf32>
    %18 = vector.broadcast %17 : vector<8x1xf32> to vector<8x8xf32>
    %19 = arith.subf %15, %18 : vector<8x8xf32>
    %20 = math.exp %19 : vector<8x8xf32>
    %cst_10 = arith.constant dense<0.000000e+00> : vector<8xf32>
    %21 = vector.multi_reduction <add>, %20, %cst_10 [1] : vector<8x8xf32> to vector<8xf32>
    %22 = vector.shape_cast %21 : vector<8xf32> to vector<8x1xf32>
    %23 = vector.broadcast %22 : vector<8x1xf32> to vector<8x8xf32>
    %24 = arith.divf %20, %23 : vector<8x8xf32>
    %c0_11 = arith.constant 0 : index
    %c0_12 = arith.constant 0 : index
    %25 = vector.load %arg5[%c0_11, %c0_12] : memref<8x8xf32, #tpu.memory_space<vmem>>, vector<8x8xf32>
    tpu.vector_store %arg5[%c0_11, %c0_12], %24 {strides = array<i32>} : memref<8x8xf32, #tpu.memory_space<vmem>>, vector<8x8xf32>,
    return
  }
  func.func @transform_0(%arg0: i32) -> (i32, i32, i32) {
    %c0_i32 = arith.constant 0 : i32
    %c0_i32_0 = arith.constant 0 : i32
    %c0_i32_1 = arith.constant 0 : i32
    return %c0_i32, %arg0, %c0_i32_0 : i32, i32, i32
  }
  func.func @transform_1(%arg0: i32) -> (i32, i32) {
    %c0_i32 = arith.constant 0 : i32
    %c0_i32_0 = arith.constant 0 : i32
    return %arg0, %c0_i32 : i32, i32
  }
  func.func @transform_2(%arg0: i32) -> (i32, i32) {
    %c0_i32 = arith.constant 0 : i32
    %c0_i32_0 = arith.constant 0 : i32
    %c0_i32_1 = arith.constant 0 : i32
    return %c0_i32, %c0_i32_0 : i32, i32
  }
  func.func @transform_3(%arg0: i32) -> (i32, i32) {
    %c0_i32 = arith.constant 0 : i32
    %c0_i32_0 = arith.constant 0 : i32
    %c0_i32_1 = arith.constant 0 : i32
    return %c0_i32, %c0_i32_0 : i32, i32
  }
  func.func @transform_4(%arg0: i32) -> (i32, i32) {
    %c0_i32 = arith.constant 0 : i32
    %c0_i32_0 = arith.constant 0 : i32
    return %arg0, %c0_i32 : i32, i32
  }
}

</mosaic_0001>

<bundles_post_ra>
// kernel: tpu_custom_call.1
= control target key start
LH: loop header
LB: loop body
LE: loop exit
PB: predicated region body
PF: predicated region fallthrough
CT: control target
= control target key end

     0   :  { %vm34_vm0 = vcmask 523264   ;;  %s571_s0 = inlined_call_operand.vmem [shape: f32[8,8,64], index: 0, kind: input, shape index: {}]   ;;  %s572_s1 = inlined_call_operand.vmem [shape: f32[8,32], index: 1, kind: input, shape index: {}]   ;;  %s573_s2 = inlined_call_operand.vmem [shape: f32[64,32], index: 2, kind: input, shape index: {}]   ;;  %s574_s3 = inlined_call_operand.vmem [shape: f32[1,32], index: 3, kind: input, shape index: {}]   ;;  %s575_s4 = inlined_call_operand.hbm [shape: f32[8,8], index: 4, kind: output, shape index: {}]  }
   0x1   :  { %v26_v0 = vld [vmem:[%s573_s2] sm:$0xff]  ;;  %v27_v1 = vld [vmem:[%s573_s2 + $0x8] sm:$0xff]  ;;  %v28_v2 = vld [vmem:[%s573_s2 + $0x10] sm:$0xff] }
   0x2   :  { %v390_v3 = vpack.c.bf16 %v27_v1, %v26_v0  ;;  %v29_v4 = vld [vmem:[%s573_s2 + $0x18] sm:$0xff]  ;;  %v30_v6 = vld [vmem:[%s573_s2 + $0x20] sm:$0xff]  ;;  %v31_v7 = vld [vmem:[%s573_s2 + $0x28] sm:$0xff] }
   0x3   :  { %v394_v5 = vpack.c.bf16 %v29_v4, %v28_v2  ;;  %v18_v8 = vld [vmem:[%s571_s0] sm:$0xff]  ;;  %v398_v10 = vpack.c.bf16 %v31_v7, %v30_v6 }
   0x4   :  { %391 = vmatprep.subr.bf16.mxu0 %v390_v3  ;;  %406 = vmatprep.subr.bf16.mxu1 %v390_v3  ;;  %v22_v9 = vld [vmem:[%s571_s0 + $0x20] sm:$0xff] }
   0x5   :  { %393 = vmatpush3.bf16.msra.mxu0 %v390_v3  ;;  %410 = vmatpush3.bf16.msra.mxu1 %v390_v3 }
   0x6   :  { %395 = vmatprep.subr.bf16.mxu0 %v394_v5  ;;  %407 = vmatprep.subr.bf16.mxu1 %v394_v5 }
   0x7   :  { %9 = vsyncpa [#allocation3], 0  ;;  %v32_v11 = vld [vmem:[%s573_s2 + $0x30] sm:$0xff]  ;;  %v33_v12 = vld [vmem:[%s573_s2 + $0x38] sm:$0xff]  ;;  %378 = vmatprep.mubr.msk.f32.mxu0 %vm34_vm0, %v18_v8  ;;  %384 = vmatprep.mubr.msk.f32.mxu1 %vm34_vm0, %v22_v9  ;;  %vm196_vm1 = vcmask 261120   ;;  %v229_v62 = vlaneseq  ;;  %vm263_vm2 = vcmask 1041409  }
   0x8   :  { %v402_v13 = vpack.c.bf16 %v33_v12, %v32_v11  ;;  %v19_v14 = vld [vmem:[%s571_s0 + $0x8] sm:$0xff]  ;;  %v20_v16 = vld [vmem:[%s571_s0 + $0x10] sm:$0xff]  ;;  %v21_v18 = vld [vmem:[%s571_s0 + $0x18] sm:$0xff]  ;;  %vm265_vm3 = vcmask 1042434   ;;  %vm267_vm4 = vcmask 1043459   ;;  %vm269_vm5 = vcmask 1044484  }
   0x9   :  { %397 = vmatpush3.bf16.msra.mxu0 %v394_v5  ;;  %411 = vmatpush3.bf16.msra.mxu1 %v394_v5  ;;  %v23_v15 = vld [vmem:[%s571_s0 + $0x28] sm:$0xff]  ;;  %v24_v17 = vld [vmem:[%s571_s0 + $0x30] sm:$0xff]  ;;  %v25_v19 = vld [vmem:[%s571_s0 + $0x38] sm:$0xff]  ;;  %v230_v63 = vand.u32 127, %v229_v62  ;;  %v232_v0 = vshrl.u32 %v229_v62, 7  ;;  %vm271_vm6 = vcmask 1045509  }
   0xa   :  { %399 = vmatprep.subr.bf16.mxu0 %v398_v10  ;;  %408 = vmatprep.subr.bf16.mxu1 %v398_v10  ;;  %v164_v20 = vld [vmem:[%s572_s1] sm:$0xff]  ;;  %vm273_vm7 = vcmask 1046534   ;;  %vm275_vm8 = vcmask 1047559   ;;  %vm310_vm9 = vcmask 64512  }
   0xb   :  { %v345_v37 = vld [vmem:[%s574_s3] ss:$0 sm:$0xff]  ;;  %v233_v2 = vsub.s32 %v230_v63, %v232_v0  ;;  %s460_s3 = smov [#allocation2]  }
   0xc   :  { %s329_s22 = sshll.u32 %s460_s3, 4  ;;  %s330_s22 = int_to_ptr.vmem [resolvable:$true] %s329_s22 }
   0xd   :  { %401 = vmatpush3.bf16.msra.mxu0 %v398_v10  ;;  %412 = vmatpush3.bf16.msra.mxu1 %v398_v10  ;;  %s436_s23 = scalar_lea.vmem %s330_s22, 128  ;;  %p441_p1 = scmp.lt.s32.totalorder %s330_s22, %s330_s22 }
   0xe   :  { %403 = vmatprep.subr.bf16.mxu0 %v402_v13  ;;  %409 = vmatprep.subr.bf16.mxu1 %v402_v13  ;;  %p437_p0 = scmp.ne.s32.totalorder %s330_s22, %s436_s23  ;;  %p442_p2 = scmp.lt.s32.totalorder %s436_s23, %s436_s23 }
  0x10   :  { %p443_p3 = por %p442_p2, %p441_p1 }
  0x11   :  { %405 = vmatpush3.bf16.msra.mxu0 %v402_v13  ;;  %413 = vmatpush3.bf16.msra.mxu1 %v402_v13 }
  0x12   :  { %p444_p4 = pnand %p443_p3, %p437_p0 }
  0x14   :  { %379 = vmatmul.mubr.msk.f32.vlgmr.msra.gmra.mrb[0].mxu0 %vm34_vm0, %v19_v14  ;;  %385 = vmatmul.mubr.msk.f32.vlgmr.msra.gmra.mrb[0].mxu1 %vm34_vm0, %v23_v15 }
  0x15   :  { %381 = vmatprep.mubr.msk.f32.mxu0 %vm34_vm0, %v20_v16  ;;  %387 = vmatprep.mubr.msk.f32.mxu1 %vm34_vm0, %v24_v17 }
  0x18   :  { %382 = vmatmul.mubr.msk.f32.gmra.mrb[2].mxu0 %vm34_vm0, %v21_v18  ;;  %388 = vmatmul.mubr.msk.f32.gmra.mrb[2].mxu1 %vm34_vm0, %v25_v19 }
  0xe7   :  { %v380_v21 = vpop.f32.mrb[0].mxu0  ;;  %v386_v22 = vpop.f32.mrb[0].mxu1 }
  0xe8   :  { %v166_v23 = vadd.f32 %v380_v21, %v164_v20  ;;  %v125_v24 = vpop.f32.mrb[1].mxu0  ;;  %v145_v25 = vpop.f32.mrb[1].mxu1  ;;  %v170_v35 = vadd.f32 %v386_v22, %v164_v20 }
  0xe9   :  { %v165_v26 = vadd.f32 %v164_v20, %v125_v24  ;;  %v169_v27 = vadd.f32 %v164_v20, %v145_v25 }
  0xea   :  { %416 = vtanh.f32 %v166_v23 }
  0xeb   :  { %418 = vtanh.f32 %v165_v26  ;;  %v383_v28 = vpop.f32.mrb[2].mxu0  ;;  %v389_v29 = vpop.f32.mrb[2].mxu1 }
  0xec   :  { %v168_v30 = vadd.f32 %v383_v28, %v164_v20  ;;  %v135_v31 = vpop.f32.mrb[3].mxu0  ;;  %v155_v32 = vpop.f32.mrb[3].mxu1  ;;  %420 = vtanh.f32 %v169_v27  ;;  %v172_v36 = vadd.f32 %v389_v29, %v164_v20 }
  0xed   :  { %v167_v33 = vadd.f32 %v164_v20, %v135_v31  ;;  %v171_v34 = vadd.f32 %v164_v20, %v155_v32 }
  0xee   :  { %422 = vtanh.f32 %v168_v30 }
  0xef   :  { %424 = vtanh.f32 %v167_v33 }
  0xf0   :  { %426 = vtanh.f32 %v171_v34 }
  0xf1   :  { %428 = vtanh.f32 %v170_v35 }
  0xf2   :  { %430 = vtanh.f32 %v172_v36 }
  0xf4   :  { %v417_v38 = vpop.eup %416 }
  0xf5   :  { %v419_v39 = vpop.eup %418  ;;  %v189_v40 = vmul.f32 %v417_v38, %v345_v37 }
  0xf6   :  { %v421_v41 = vpop.eup %420  ;;  %v188_v43 = vmul.f32 %v419_v39, %v345_v37 }
  0xf7   :  { %v200_v42 = vsel %vm196_vm1, %v189_v40, 0.0  ;;  %v192_v47 = vmul.f32 %v421_v41, %v345_v37 }
  0xf8   :  { %v423_v44 = vpop.eup %422  ;;  %201 = vadd.xlane.f32.xlu0 %v200_v42  ;;  %v197_v49 = vsel %vm196_vm1, %v188_v43, 0.0 }
  0xf9   :  { %v425_v45 = vpop.eup %424  ;;  %v191_v46 = vmul.f32 %v423_v44, %v345_v37  ;;  %v209_v53 = vsel %vm196_vm1, %v192_v47, 0.0 }
  0xfa   :  { %v427_v48 = vpop.eup %426  ;;  %v190_v51 = vmul.f32 %v425_v45, %v345_v37 }
  0xfb   :  { %v206_v50 = vsel %vm196_vm1, %v191_v46, 0.0  ;;  %v429_v52 = vpop.eup %428  ;;  %v194_v54 = vmul.f32 %v427_v48, %v345_v37 }
  0xfc   :  { %198 = vadd.xlane.f32.xlu0 %v197_v49  ;;  %207 = vadd.xlane.f32.xlu1 %v206_v50  ;;  %v203_v55 = vsel %vm196_vm1, %v190_v51, 0.0  ;;  %v193_v56 = vmul.f32 %v429_v52, %v345_v37  ;;  %v431_v57 = vpop.eup %430 }
  0xfd   :  { %v215_v58 = vsel %vm196_vm1, %v194_v54, 0.0  ;;  %v195_v60 = vmul.f32 %v431_v57, %v345_v37 }
  0xfe   :  { %v212_v59 = vsel %vm196_vm1, %v193_v56, 0.0 }
  0xff   :  { %v218_v61 = vsel %vm196_vm1, %v195_v60, 0.0 }
 0x100   :  { %204 = vadd.xlane.f32.xlu1 %v203_v55  ;;  %210 = vadd.xlane.f32.xlu0 %v209_v53 }
 0x104   :  { %213 = vadd.xlane.f32.xlu1 %v212_v59  ;;  %216 = vadd.xlane.f32.xlu0 %v215_v58 }
 0x108   :  { %219 = vadd.xlane.f32.xlu1 %v218_v61 }
 0x185   :  { %v202_v1 = vpop.xlane.xlu0 %201 }
 0x186   :  { %v238_v6 = vrot.slane %v202_v1, %v233_v2 }
 0x189   :  { %v199_v3 = vpop.xlane.xlu0 %198  ;;  %v208_v4 = vpop.xlane.xlu1 %207 }
 0x18a   :  { %v234_v5 = vrot.slane %v199_v3, %v233_v2  ;;  %v246_v12 = vrot.slane %v208_v4, %v233_v2 }
 0x18c   :  { %v264_v11 = vsel %vm263_vm2, %v238_v6, %v234_v5 }
 0x18d   :  { %v205_v7 = vpop.xlane.xlu1 %204  ;;  %v211_v8 = vpop.xlane.xlu0 %210 }
 0x18e   :  { %v242_v9 = vrot.slane %v205_v7, %v233_v2  ;;  %v250_v10 = vrot.slane %v211_v8, %v233_v2 }
 0x190   :  { %v266_v13 = vsel %vm265_vm3, %v242_v9, %v264_v11 }
 0x191   :  { %v268_v14 = vsel %vm267_vm4, %v246_v12, %v266_v13  ;;  %v214_v15 = vpop.xlane.xlu1 %213  ;;  %v217_v16 = vpop.xlane.xlu0 %216 }
 0x192   :  { %v270_v17 = vsel %vm269_vm5, %v250_v10, %v268_v14  ;;  %v254_v18 = vrot.slane %v214_v15, %v233_v2  ;;  %v258_v19 = vrot.slane %v217_v16, %v233_v2 }
 0x194   :  { %v272_v20 = vsel %vm271_vm6, %v254_v18, %v270_v17 }
 0x195   :  { %v220_v21 = vpop.xlane.xlu1 %219  ;;  %v274_v23 = vsel %vm273_vm7, %v258_v19, %v272_v20 }
 0x196   :  { %v262_v22 = vrot.slane %v220_v21, %v233_v2 }
 0x198   :  { %v276_v24 = vsel %vm275_vm8, %v262_v22, %v274_v23 }
 0x199   :  { %278 = vxpose.xlu0.b32.start.end [1/1] (short) (narrow) %v276_v24, 8 }
 0x219   :  { %v294_v25 = vpop.trf.xlu0 }
 0x21a   :  { %v311_v26 = vsel %vm310_vm9, %v294_v25, -inf }
 0x21b   :  { %312 = vmax.xlane.f32.xlu1 %v311_v26 }
 0x2a8   :  { %v313_v27 = vpop.xlane.xlu1 %312 }
 0x2a9   :  { %v314_v28 = vsub.f32 %v294_v25, %v313_v27 }
 0x2ab   :  { %v315_v29 = vmul.f32 1.442695, %v314_v28 }
 0x2ad   :  { %432 = vpow2.f32 %v315_v29 }
 0x2b7   :  { %v433_v30 = vpop.eup %432 }
 0x2b8   :  { %v317_v31 = vsel %vm310_vm9, %v433_v30, 0.0 }
 0x2b9   :  { %318 = vadd.xlane.f32.xlu1 %v317_v31 }
 0x346   :  { %v319_v32 = vpop.xlane.xlu1 %318 }
 0x347   :  { %434 = vrcp.f32 %v319_v32 }
 0x351   :  { %v435_v33 = vpop.eup %434 }
 0x352   :  { %v321_v34 = vmul.f32 %v435_v33, %v433_v30 }
 0x354   :  { %322 = vst.msk [vmem:[#allocation2] sm:$0xff] %vm310_vm9, %v321_v34 }
 0x355   :  { %447 = shalt.err (!%p444_p4)
}
 0x356   :  { %s448_s26 = scalar_lea.hbm %s575_s4, 128 }
 0x357   :  { %p449_p5 = scmp.ne.s32.totalorder %s575_s4, %s448_s26  ;;  %p452_p6 = scmp.lt.u32.totalorder %s448_s26, %s575_s4 }
 0x359   :  { %p454_p7 = pnand %p452_p6, %p449_p5 }
 0x35b   :  { %457 = shalt.err (!%p454_p7)
}
 0x35c   :  { %332 = dma.vmem_to_hbm [thread:$0]  %s330_s22, 128, %s575_s4, [#allocation3]  }
 0x35d   :  { %458 = dma.done.wait [#allocation3], 128  }
 0x35e   :  { %459 = vsyncadd [#allocation3], 4294967168 }
 0x35f   :  { %336 = vsyncpa [#allocation3], 1 }

</bundles_post_ra>
